<compile_context>
chip_gen: v6e
topology: v6e:2x2x1
jax: 0.10.0
libtpu: 0.0.40
codegen_flags: <defaults>
</compile_context>

<pallas_src>
import functools

import jax
import jax.numpy as jnp
from jax.experimental import pallas as pl
from jax.experimental.pallas import tpu as pltpu


def _round_up(x: int, m: int) -> int:
    return ((x + m - 1) // m) * m


def _compute_logits(x_ref, w_ref, use_bf16: bool):
    """(TB, D) x (C, D) -> (TB, C), contracting the shared D axis (no transpose)."""
    x = x_ref[...]
    w = w_ref[...]
    if use_bf16:
        x = x.astype(jnp.bfloat16)
        w = w.astype(jnp.bfloat16)
    return jax.lax.dot_general(
        x, w,
        dimension_numbers=(((1,), (1,)), ((), ())),
        preferred_element_type=jnp.float32,
    )


def _ce_rows(logits, tgt):
    """Per-row CE loss and per-row correct indicator (f32), shape (TB, 1)."""
    tb, c = logits.shape
    m = jnp.max(logits, axis=-1, keepdims=True)                        # (TB, 1)
    lse = m + jnp.log(jnp.sum(jnp.exp(logits - m), axis=-1, keepdims=True))
    ids = jax.lax.broadcasted_iota(jnp.int32, (tb, c), 1)               # (TB, C)
    # target logit without materializing a float one-hot
    picked = jnp.sum(jnp.where(ids == tgt, logits, 0.0), axis=-1, keepdims=True)
    loss_rows = lse - picked                                            # -log p[target]
    # argmax with smallest-index tie-break (matches torch argmax/topk semantics)
    pred = jnp.min(jnp.where(logits >= m, ids, c), axis=-1, keepdims=True)
    corr_rows = (pred == tgt).astype(jnp.float32)
    return loss_rows, corr_rows


def _softmax_ce_kernel(x_ref, w_ref, t_ref, logits_ref, loss_ref, corr_ref,
                       *, use_bf16):
    logits = _compute_logits(x_ref, w_ref, use_bf16)
    logits_ref[...] = logits.astype(logits_ref.dtype)
    loss_rows, corr_rows = _ce_rows(logits, t_ref[...])
    loss_ref[...] = loss_rows
    corr_ref[...] = corr_rows


def _softmax_ce_kernel_no_logits(x_ref, w_ref, t_ref, loss_ref, corr_ref,
                                 *, use_bf16):
    logits = _compute_logits(x_ref, w_ref, use_bf16)
    loss_rows, corr_rows = _ce_rows(logits, t_ref[...])
    loss_ref[...] = loss_rows
    corr_ref[...] = corr_rows


def softmax_forward(inputs, weight, targets, *, block_b=128,
                    return_logits=True, use_bf16_matmul=False):
    """inputs: (B, D) f32, weight: (C, D) f32 (PyTorch Linear layout, untransposed),
    targets: (B,) int. Returns dict(loss, top1[, logits])."""
    B, D = inputs.shape
    C, D_w = weight.shape
    assert D == D_w, "weight must be (out_features, in_features)"

    # batch tile: multiple of 8 sublanes, no larger than the (padded) batch
    TB = min(_round_up(block_b, 8), _round_up(B, 8))
    Bp = _round_up(B, TB)
    num_tiles = Bp // TB

    x = inputs
    t = targets.astype(jnp.int32).reshape(B, 1)
    if Bp != B:
        x = jnp.pad(x, ((0, Bp - B), (0, 0)))
        t = jnp.pad(t, ((0, Bp - B), (0, 0)), constant_values=-1)  # never matches

    # explicit VMEM budget: 2x(double-buffered) activations/targets/outputs + W
    vmem_bytes = (
        2 * C * D * 4              # resident weight (conservatively x2)
        + 2 * TB * D * 4           # x tile, double-buffered
        + 2 * TB * C * 4           # logits tile, double-buffered
        + 2 * TB * 4 * 3           # targets + per-row loss/correct
        + (2 * TB * C * 2 + 2 * C * D * 2 if use_bf16_matmul else 0)
    )
    vmem_limit = int(min(96 * 2**20, max(16 * 2**20, 2 * vmem_bytes)))

    compiler_params = pltpu.CompilerParams(
        dimension_semantics=("parallel",),   # B tiles shard across TensorCores
        vmem_limit_bytes=vmem_limit,
    )

    in_specs = [
        pl.BlockSpec((TB, D), lambda i: (i, 0)),   # activation tile (pipelined)
        pl.BlockSpec((C, D), lambda i: (0, 0)),    # weight, resident across grid
        pl.BlockSpec((TB, 1), lambda i: (i, 0)),   # targets tile
    ]
    row_spec = pl.BlockSpec((TB, 1), lambda i: (i, 0))
    row_shape = jax.ShapeDtypeStruct((Bp, 1), jnp.float32)

    if return_logits:
        kernel = functools.partial(_softmax_ce_kernel, use_bf16=use_bf16_matmul)
        logits_p, loss_rows, corr_rows = pl.pallas_call(
            kernel,
            grid=(num_tiles,),
            out_shape=(jax.ShapeDtypeStruct((Bp, C), jnp.float32),
                       row_shape, row_shape),
            in_specs=in_specs,
            out_specs=(pl.BlockSpec((TB, C), lambda i: (i, 0)),
                       row_spec, row_spec),
            compiler_params=compiler_params,
        )(x, weight, t)
        logits = logits_p[:B]
    else:
        kernel = functools.partial(_softmax_ce_kernel_no_logits,
                                   use_bf16=use_bf16_matmul)
        loss_rows, corr_rows = pl.pallas_call(
            kernel,
            grid=(num_tiles,),
            out_shape=(row_shape, row_shape),
            in_specs=in_specs,
            out_specs=(row_spec, row_spec),
            compiler_params=compiler_params,
        )(x, weight, t)
        logits = None

    inv_b = jnp.float32(1.0 / B)
    loss = jnp.sum(loss_rows[:B, 0]) * inv_b              # multiply, not divide
    top1 = jnp.sum(corr_rows[:B, 0]) * (jnp.float32(100.0) * inv_b)

    out = {"loss": loss, "top1": top1}
    if return_logits:
        out["logits"] = logits
    return out
    # TODO(synk): the PyTorch helper computes topk=(1,5) but the module only
    #             returns top-1; top-5 is therefore not computed here.


if __name__ == "__main__":
    # small shapes; B=20 with block_b=8 exercises the grid (3 tiles) + padding
    B, in_features, out_features = 20, 32, 16

    key = jax.random.PRNGKey(0)
    kx, kw, kt = jax.random.split(key, 3)

    x = jax.random.normal(kx, (B, in_features), dtype=jnp.float32)
    # nn.init.normal_(weight, std=0.001); PyTorch Linear weight shape (out, in)
    weight = 0.001 * jax.random.normal(kw, (out_features, in_features),
                                       dtype=jnp.float32)
    targets = jax.random.randint(kt, (B,), 0, out_features, dtype=jnp.int32)

    out = softmax_forward(x, weight, targets, block_b=8)
    jax.block_until_ready(out)

    # pure-JAX reference
    ref_logits = x @ weight.T
    ref_loss = jnp.mean(
        jax.nn.logsumexp(ref_logits, axis=-1)
        - jnp.take_along_axis(ref_logits, targets[:, None], axis=-1)[:, 0]
    )
    ref_top1 = jnp.mean(
        (jnp.argmax(ref_logits, axis=-1) == targets).astype(jnp.float32)) * 100.0

    assert out["logits"].shape == (B, out_features)
    assert jnp.allclose(out["logits"], ref_logits, atol=1e-5, rtol=1e-5)
    assert jnp.allclose(out["loss"], ref_loss, atol=1e-5, rtol=1e-5)
    assert jnp.allclose(out["top1"], ref_top1, atol=1e-4)

    # loss-only fast path: skips the (B, C) logits HBM writeback
    out2 = softmax_forward(x, weight, targets, block_b=8, return_logits=False)
    jax.block_until_ready(out2)
    assert jnp.allclose(out2["loss"], ref_loss, atol=1e-5, rtol=1e-5)
    assert jnp.allclose(out2["top1"], ref_top1, atol=1e-4)

    print("KERNEL_OK")
</pallas_src>

<mosaic_0001>
module attributes {stable_mosaic.version = 11 : i64} {
  func.func @_softmax_ce_kernel(%arg0: i32, %arg1: memref<8x32xf32, #tpu.memory_space<vmem>>, %arg2: memref<16x32xf32, #tpu.memory_space<vmem>>, %arg3: memref<8x1xi32, #tpu.memory_space<vmem>>, %arg4: memref<8x16xf32, #tpu.memory_space<vmem>>, %arg5: memref<8x1xf32, #tpu.memory_space<vmem>>, %arg6: memref<8x1xf32, #tpu.memory_space<vmem>>) attributes {dimension_semantics = [#tpu.dimension_semantics<parallel>], iteration_bounds = array<i64: 3>, scalar_prefetch = 0 : i64, scratch_operands = 0 : i64, tpu.core_type = #tpu.core_type<tc>, window_params = [{transform_indices = @transform_0, window_bounds = array<i64: 8, 32>}, {pipeline_mode = #tpu.pipeline_mode<synchronous>, transform_indices = @transform_1, window_bounds = array<i64: 16, 32>}, {transform_indices = @transform_2, window_bounds = array<i64: 8, 1>}, {transform_indices = @transform_3, window_bounds = array<i64: 8, 16>}, {transform_indices = @transform_4, window_bounds = array<i64: 8, 1>}, {transform_indices = @transform_5, window_bounds = array<i64: 8, 1>}]} {
    %c0 = arith.constant 0 : index
    %c0_0 = arith.constant 0 : index
    %0 = vector.load %arg1[%c0, %c0_0] : memref<8x32xf32, #tpu.memory_space<vmem>>, vector<8x32xf32>
    %c0_1 = arith.constant 0 : index
    %c0_2 = arith.constant 0 : index
    %1 = vector.load %arg2[%c0_1, %c0_2] : memref<16x32xf32, #tpu.memory_space<vmem>>, vector<16x32xf32>
    %cst = arith.constant dense<0.000000e+00> : vector<8x16xf32>
    %2 = tpu.matmul %0, %1, %cst {dimension_numbers = #tpu.dot_dimension_numbers<[1], [1], [0], [0], [0, 0, 1, 0], [], []>} : vector<8x32xf32>, vector<16x32xf32>, vector<8x16xf32> -> vector<8x16xf32>
    %c0_3 = arith.constant 0 : index
    %c0_4 = arith.constant 0 : index
    %3 = vector.load %arg4[%c0_3, %c0_4] : memref<8x16xf32, #tpu.memory_space<vmem>>, vector<8x16xf32>
    tpu.vector_store %arg4[%c0_3, %c0_4], %2 {strides = array<i32>} : memref<8x16xf32, #tpu.memory_space<vmem>>, vector<8x16xf32>,
    %c0_5 = arith.constant 0 : index
    %c0_6 = arith.constant 0 : index
    %4 = vector.load %arg3[%c0_5, %c0_6] : memref<8x1xi32, #tpu.memory_space<vmem>>, vector<8x1xi32>
    %cst_7 = arith.constant dense<0xFF800000> : vector<8xf32>
    %5 = vector.multi_reduction <maximumf>, %2, %cst_7 [1] : vector<8x16xf32> to vector<8xf32>
    %6 = vector.shape_cast %5 : vector<8xf32> to vector<8x1xf32>
    %7 = vector.broadcast %6 : vector<8x1xf32> to vector<8x16xf32>
    %8 = arith.subf %2, %7 : vector<8x16xf32>
    %9 = math.exp %8 : vector<8x16xf32>
    %cst_8 = arith.constant dense<0.000000e+00> : vector<8xf32>
    %10 = vector.multi_reduction <add>, %9, %cst_8 [1] : vector<8x16xf32> to vector<8xf32>
    %11 = vector.shape_cast %10 : vector<8xf32> to vector<8x1xf32>
    %12 = math.log %11 : vector<8x1xf32>
    %13 = arith.addf %6, %12 : vector<8x1xf32>
    %14 = tpu.iota {dimensions = array<i32: 1>} : vector<8x16xi32>
    %15 = vector.broadcast %4 : vector<8x1xi32> to vector<8x16xi32>
    %16 = arith.cmpi eq, %14, %15 : vector<8x16xi32>
    %cst_9 = arith.constant 0.000000e+00 : f32
    %17 = vector.broadcast %cst_9 : f32 to vector<8x16xf32>
    %18 = arith.select %16, %2, %17 : vector<8x16xi1>, vector<8x16xf32>
    %cst_10 = arith.constant dense<0.000000e+00> : vector<8xf32>
    %19 = vector.multi_reduction <add>, %18, %cst_10 [1] : vector<8x16xf32> to vector<8xf32>
    %20 = vector.shape_cast %19 : vector<8xf32> to vector<8x1xf32>
    %21 = arith.subf %13, %20 : vector<8x1xf32>
    %22 = vector.broadcast %6 : vector<8x1xf32> to vector<8x16xf32>
    %23 = arith.cmpf oge, %2, %22 : vector<8x16xf32>
    %c16_i32 = arith.constant 16 : i32
    %24 = vector.broadcast %c16_i32 : i32 to vector<8x16xi32>
    %25 = arith.select %23, %14, %24 : vector<8x16xi1>, vector<8x16xi32>
    %cst_11 = arith.constant dense<2147483647> : vector<8xi32>
    %26 = vector.multi_reduction <minsi>, %25, %cst_11 [1] : vector<8x16xi32> to vector<8xi32>
    %27 = vector.shape_cast %26 : vector<8xi32> to vector<8x1xi32>
    %28 = arith.cmpi eq, %27, %4 : vector<8x1xi32>
    %29 = arith.extui %28 : vector<8x1xi1> to vector<8x1xi32>
    %30 = arith.sitofp %29 : vector<8x1xi32> to vector<8x1xf32>
    %c0_12 = arith.constant 0 : index
    %c0_13 = arith.constant 0 : index
    %31 = vector.load %arg5[%c0_12, %c0_13] : memref<8x1xf32, #tpu.memory_space<vmem>>, vector<8x1xf32>
    tpu.vector_store %arg5[%c0_12, %c0_13], %21 {strides = array<i32>} : memref<8x1xf32, #tpu.memory_space<vmem>>, vector<8x1xf32>,
    %c0_14 = arith.constant 0 : index
    %c0_15 = arith.constant 0 : index
    %32 = vector.load %arg6[%c0_14, %c0_15] : memref<8x1xf32, #tpu.memory_space<vmem>>, vector<8x1xf32>
    tpu.vector_store %arg6[%c0_14, %c0_15], %30 {strides = array<i32>} : memref<8x1xf32, #tpu.memory_space<vmem>>, vector<8x1xf32>,
    return
  }
  func.func @transform_0(%arg0: i32) -> (i32, i32) {
    %c0_i32 = arith.constant 0 : i32
    %c0_i32_0 = arith.constant 0 : i32
    return %arg0, %c0_i32 : i32, i32
  }
  func.func @transform_1(%arg0: i32) -> (i32, i32) {
    %c0_i32 = arith.constant 0 : i32
    %c0_i32_0 = arith.constant 0 : i32
    %c0_i32_1 = arith.constant 0 : i32
    return %c0_i32, %c0_i32_0 : i32, i32
  }
  func.func @transform_2(%arg0: i32) -> (i32, i32) {
    %c0_i32 = arith.constant 0 : i32
    %c0_i32_0 = arith.constant 0 : i32
    return %arg0, %c0_i32 : i32, i32
  }
  func.func @transform_3(%arg0: i32) -> (i32, i32) {
    %c0_i32 = arith.constant 0 : i32
    %c0_i32_0 = arith.constant 0 : i32
    return %arg0, %c0_i32 : i32, i32
  }
  func.func @transform_4(%arg0: i32) -> (i32, i32) {
    %c0_i32 = arith.constant 0 : i32
    %c0_i32_0 = arith.constant 0 : i32
    return %arg0, %c0_i32 : i32, i32
  }
  func.func @transform_5(%arg0: i32) -> (i32, i32) {
    %c0_i32 = arith.constant 0 : i32
    %c0_i32_0 = arith.constant 0 : i32
    return %arg0, %c0_i32 : i32, i32
  }
}

</mosaic_0001>

<bundles_post_ra>
// kernel: tpu_custom_call.1
= control target key start
LH: loop header
LB: loop body
LE: loop exit
PB: predicated region body
PF: predicated region fallthrough
CT: control target
= control target key end

     0   :  { %11 = vsyncpa [#allocation3], 0  ;;  %s676_s18 = smov 0   ;;  %s740_s0 = inlined_call_operand.vmem [shape: f32[24,32], index: 0, kind: input, shape index: {}]   ;;  %s741_s1 = inlined_call_operand.hbm [shape: f32[16,32], index: 1, kind: input, shape index: {}]   ;;  %s742_s2 = inlined_call_operand.vmem [shape: s32[24,1], index: 2, kind: input, shape index: {}]   ;;  %s743_s3 = inlined_call_operand.vmem [shape: f32[24,16], index: 3, kind: output, shape index: {0}]   ;;  %s744_s4 = inlined_call_operand.vmem [shape: f32[24,1], index: 4, kind: output, shape index: {1}]   ;;  %s745_s5 = inlined_call_operand.vmem [shape: f32[24,1], index: 5, kind: output, shape index: {2}]  }
   0x1 LB: > { %s682_s19 = sadd.s32 4294967295, %s638_s18   ;;  %p546_p0 = scmp.ge.s32.totalorder %s638_s18, 1  ;;  %s638_s18 = sphi %s676_s18, %s17_s18  }
   0x2   : > { %p173_p1 = scmp.lt.s32.totalorder %s638_s18, 4  ;;  %s640_s20 = smov [#allocation2]  }
   0x3   : > { %s185_s21 = sshll.u32 %s640_s20, 4  ;;  %p580_p3 = scmp.eq.s32.totalorder %s682_s19, 0  ;;  %s186_s21 = int_to_ptr.vmem [resolvable:$true] %s185_s21 }
   0x4   : > { %p686_p2 = pnand %p546_p0, %p173_p1  ;;  %s613_s23 = scalar_lea.vmem %s186_s21, 256 }
   0x5   : > { %p614_p7 = scmp.ne.s32.totalorder %s186_s21, %s613_s23  ;;  %p621_p10 = scmp.lt.s32.totalorder %s186_s21, %s186_s21 }
   0x6   : > { %p576_p4 = pneg %p686_p2  ;;  %p622_p11 = scmp.lt.s32.totalorder %s613_s23, %s613_s23 }
   0x8   : > { %p577_p5 = pnand %p580_p3, %p576_p4  ;;  %p623_p12 = por %p622_p11, %p621_p10 }
   0xa   : > { %p604_p6 = pneg %p577_p5 }
   0xc   : > { %p616_p8 = pnand %p614_p7, %p604_p6 }
   0xe   : > { %p617_p9 = pneg %p616_p8 }
  0x10   : > { %p624_p13 = pnand %p623_p12, %p617_p9 }
  0x12   : > { %627 = shalt.err (!%p624_p13)
}
  0x13   : > { %s641_s24 = smov 128   ;;  %s642_s25 = smov 8  }
  0x14   : > { %579 = dma.hbm_to_vmem [thread:$0]  (!%p577_p5), %s741_s1, 256, %s186_s21, [#allocation3], %s641_s24, %s641_s24, %s642_s25  }
  0x15   : > { %215 = sbr.rel (%p686_p2) target bundleno = 661 (0x295), region = 32 }
  0x1a   : > { %633 = dma.done.wait (%p580_p3), [#allocation3], 256  }
  0x1b   : > { %635 = vsyncadd (%p580_p3), [#allocation3], 4294967040  ;;  %p253_p0 = scmp.lt.s32.totalorder %s682_s19, 2  ;;  %v643_v0 = vmov 0.0   ;;  %vm644_vm0 = vmmov 0   ;;  %v645_v1 = vmov 0   ;;  %v371_v9 = vlaneseq }
  0x1c   : > { %565 = vmatprep.subr.mxu0 %v643_v0  ;;  %569 = vmatprep.mubr.msk.f32.mxu0 %vm644_vm0, %v643_v0  ;;  %vm276_vm1 = vcmask 261120   ;;  %v275_v2 = vld [vmem:[#allocation2 + $0x8] sm:$0xff]  ;;  %v274_v4 = vld [vmem:[#allocation2] sm:$0xff]  ;;  %vm356_vm2 = vcmask 130048   ;;  %vm402_vm6 = vcmask 7168  }
  0x1d   : > { %s748_s19 = smov (!%p253_p0, %s682_s19), 2  ;;  %596 = vset.pattern.permute.xlu1 %v645_v1  ;;  %597 = vset.pattern.permute.xlu0 %v645_v1  ;;  %v372_v10 = vand.u32 127, %v371_v9 }
  0x1e   : > { %s708_s28 = sshll.u32 %s748_s19, 3  ;;  %566 = vmatpush3.xpose.msk.msra.mxu0 %vm276_vm1, %v275_v2 }
  0x1f   : > { %s260_s6 = scalar_lea.vmem %s742_s2, %s708_s28  ;;  %567 = vmatprep.subr.mxu0 %v643_v0  ;;  %s256_s9 = scalar_lea.vmem %s740_s0, %s708_s28 }
  0x20   : > { %v358_v3 = vld [vmem:[%s260_s6] sm:$0xff]  ;;  %s264_s12 = scalar_lea.vmem %s743_s3, %s708_s28  ;;  %s272_s15 = scalar_lea.vmem %s745_s5, %s708_s28 }
  0x21   : > { %374 = vperm.xlu1 %596, %v358_v3   ;;  %v273_v5 = vld [vmem:[%s256_s9] sm:$0xff]  ;;  %s268_s19 = scalar_lea.vmem %s744_s4, %s708_s28 }
  0x22   : > { %568 = vmatpush3.xpose.msk.msra.mxu0 %vm276_vm1, %v274_v4 }
  0x25   : > { %570 = vmatmul.mubr.msk.f32.vlgmr.msra.gmra.mxu0 %vm276_vm1, %v273_v5 }
  0x9c   : > { %v375_v21 = vpop.permute.xlu1 %374 }
  0x9d   : > { %vm376_vm4 = vcmp.eq.s32.totalorder %v372_v10, %v375_v21 }
  0xe5   : > { %v352_v6 = vpop.f32.mrf.mxu0 }
  0xe6   : > { %v359_v7 = vsel %vm356_vm2, %v352_v6, -inf  ;;  %357 = vst.msk [vmem:[%s264_s12] sm:$0xff] %vm356_vm2, %v352_v6  ;;  %v377_v25 = vsel %vm376_vm4, %v352_v6, 0.0 }
  0xe7   : > { %360 = vmax.xlane.f32.xlu0 %v359_v7  ;;  %v571_v8 = vpop.f32.mrf.mxu0  ;;  %v378_v26 = vsel %vm356_vm2, %v377_v25, 0.0 }
 0x170   : > { %v361_v11 = vpop.xlane.xlu0 %360 }
 0x171   : > { %v362_v12 = vsub.f32 %v352_v6, %v361_v11  ;;  %vm382_vm3 = vcmp.ge.f32.partialorder %v352_v6, %v361_v11 }
 0x172   : > { %v383_v13 = vsel %vm382_vm3, %v372_v10, 16 }
 0x173   : > { %v363_v14 = vmul.f32 1.442695, %v362_v12  ;;  %v384_v15 = vsel %vm356_vm2, %v383_v13, 2147483647 }
 0x174   : > { %v386_v16 = vshra.s32 %v384_v15, 16  ;;  %v385_v20 = vand.u32 65535, %v384_v15 }
 0x175   : > { %598 = vpow2.f32 %v363_v14 }
 0x176   : > { %v388_v17 = vcvt.s32.f32 %v386_v16  ;;  %v387_v23 = vcvt.s32.f32 %v385_v20 }
 0x178   : > { %389 = vmin.xlane.f32.xlu0 %v388_v17 }
 0x182   : > { %v599_v18 = vpop.eup %598 }
 0x183   : > { %v365_v19 = vsel %vm356_vm2, %v599_v18, 0.0 }
 0x184   : > { %366 = vadd.xlane.f32.xlu1 %v365_v19 }
 0x201   : > { %v390_v22 = vpop.xlane.xlu0 %389 }
 0x202   : > { %vm391_vm5 = vcmp.eq.f32.partialorder %v388_v17, %v390_v22  ;;  %v396_v29 = vcvt.f32.s32 %v390_v22 }
 0x203   : > { %v392_v24 = vsel %vm391_vm5, %v387_v23, inf }
 0x204   : > { %393 = vmin.xlane.f32.xlu0 %v392_v24  ;;  %v397_v32 = vshll.u32 %v396_v29, 16 }
 0x208   : > { %379 = vadd.xlane.f32.xlu0 %v378_v26 }
 0x20d   : > { %v367_v27 = vpop.xlane.xlu1 %366 }
 0x20e   : > { %600 = vlog2.f32 %v367_v27 }
 0x21b   : > { %v601_v28 = vpop.eup %600 }
 0x21c   : > { %v369_v30 = vmul.f32 0.6931472, %v601_v28 }
 0x21e   : > { %v370_v35 = vadd.f32 %v369_v30, %v361_v11 }
 0x28d   : > { %v394_v31 = vpop.xlane.xlu0 %393 }
 0x28e   : > { %v395_v33 = vcvt.f32.s32 %v394_v31 }
 0x290   : > { %v398_v34 = vadd.s32 %v397_v32, %v395_v33 }
 0x291   : > { %v380_v36 = vpop.xlane.xlu0 %379 }
 0x292   : > { %vm399_vm7 = vcmp.eq.s32.totalorder %v398_v34, %v358_v3  ;;  %v381_v37 = vsub.f32 %v370_v35, %v380_v36 }
 0x293   : > { %v559_v38 = vsel %vm399_vm7, 1.0, %v643_v0 }
 0x294   : > { %404 = vst.msk [vmem:[%s272_s15] sm:$0xff] %vm402_vm6, %v559_v38  ;;  %403 = vst.msk [vmem:[%s268_s19] sm:$0xff] %vm402_vm6, %v381_v37 }
 0x295 PF: > { %s17_s18 = sadd.s32 1, %s638_s18  }
 0x296   : > { %p14_p1 = scmp.ge.s32.totalorder %s17_s18, 5  }
 0x298   :  { %16 = sbr.rel (!%p14_p1) target bundleno = 1 (0x1), region = 94 }
 0x29d   :  { %452 = vsyncpa [#allocation3], 1 }
 0x29e   :  { %454 = vsyncpa [#allocation3 + $0x1], 1 }

</bundles_post_ra>
